<compile_context>
chip_gen: v7x
topology: tpu7x:2x2x1
jax: 0.10.0
libtpu: 0.0.40
codegen_flags: <defaults>
</compile_context>

<pallas_src>
import functools

import numpy as np

import jax
import jax.numpy as jnp
from jax import lax
from jax.experimental import pallas as pl
from jax.experimental.pallas import tpu as pltpu


def _round_up(a, m):
    return (a + m - 1) // m * m


def _vmem_capacity():
    try:
        return int(pltpu.get_tpu_info().vmem_capacity_bytes)
    except Exception:
        return 64 << 20                      # conservative: v7x physical VMEM


def _est_vmem(tile_n, tile_d, g_pad, itemsize, x_bufs):
    return (x_bufs * tile_n * tile_d * itemsize     # pipelined x blocks
            + 2 * g_pad * tile_d * 4                # resident f32 output block(s)
            + x_bufs * tile_n * 4                   # batch-id blocks
            + (2 << 20))                            # slack (iota / one-hot temps)


def _choose_tiles(n, d, g_pad, itemsize, max_tile_n, tile_d):
    tile_n = min(max_tile_n, _round_up(n, 128))
    if tile_d is None:
        tile_d = d
        if d % 128 == 0 and d >= 256:
            # Split the feature axis so the "parallel" grid dim is real on v7x
            # megacore (feature tiles stay lane-dense multiples of 128).
            for cand in (512, 256, 128):
                if d % cand == 0 and d // cand >= 2:
                    tile_d = cand
                    break
    assert d % tile_d == 0

    cap = _vmem_capacity()
    budget = max(32 << 20, min(int(cap * 0.8), cap - (16 << 20)))

    # Clamp node tile, then feature tile, until a double-buffered set fits.
    while _est_vmem(tile_n, tile_d, g_pad, itemsize, 2) > budget and tile_n > 128:
        tile_n = max(128, (tile_n // 2) // 128 * 128)
    while (_est_vmem(tile_n, tile_d, g_pad, itemsize, 2) > budget
           and tile_d > 128 and d % 128 == 0 and d % max(128, tile_d // 2) == 0):
        tile_d = max(128, tile_d // 2)
    # TODO(synk): if 2 * g_pad * tile_d * 4 alone exceeds the budget (very large
    # num_graphs on 64 MiB v7x), add a graph-axis grid dim with its own output block.
    return tile_n, tile_d, budget


def _make_x_spec(tile_n, tile_d, x_bufs):
    idx = lambda j, i, glo: (i, j)
    if x_bufs > 2 and hasattr(pl, "Buffered"):
        try:
            return pl.BlockSpec((tile_n, tile_d), idx,
                                pipeline_mode=pl.Buffered(x_bufs))
        except TypeError:
            pass
    return pl.BlockSpec((tile_n, tile_d), idx)


def _global_pool_kernel(g_lo_ref, b_ref, x_ref, o_ref, *,
                        aggr, window, g_pad, tile_n, n_valid):
    i = pl.program_id(1)                       # node (reduction) axis
    last = pl.num_programs(1) - 1

    @pl.when(i == 0)
    def _():
        if aggr == "max":
            o_ref[...] = jnp.full(o_ref.shape, -jnp.inf, o_ref.dtype)
        else:
            o_ref[...] = jnp.zeros(o_ref.shape, o_ref.dtype)

    rem = n_valid % tile_n                     # static
    if rem != 0 and aggr != "max":
        # Only the single ragged last tile pays this: zero the garbage rows of
        # the partial DMA before any read of the block (input blocks are never
        # written back, so the in-place write is safe).
        @pl.when(i == last)
        def _():
            x_ref[pl.ds(rem, tile_n - rem), :] = jnp.zeros(
                (tile_n - rem, x_ref.shape[1]), x_ref.dtype)

    if window == g_pad:
        g_lo = 0                               # static -> static slices below
    else:
        g_lo = pl.multiple_of(g_lo_ref[i], 8)  # sorted-batch graph window start

    def _off(g0):
        return g0 if isinstance(g0, int) else pl.multiple_of(g0, 8)

    x = x_ref[...]

    if aggr in ("add", "mean"):
        b = b_ref[...]                                           # (1, tile_n)
        gids = lax.broadcasted_iota(jnp.int32, (window, tile_n), 0) + g_lo
        onehot = gids == b                                       # (window, tile_n)
        # bf16 inputs stay bf16 on the MXU; everything else runs in f32.
        mm_dtype = jnp.bfloat16 if x.dtype == jnp.bfloat16 else jnp.float32
        part = jnp.dot(onehot.astype(mm_dtype), x.astype(mm_dtype),
                       preferred_element_type=jnp.float32)       # (window, tile_d)
        if window == g_pad:
            o_ref[...] += part
        else:
            o_ref[pl.ds(g_lo, window), :] += part
    else:  # 'max': per-graph masked max inside the window, 8-row output chunks
        b = b_ref[...]                                           # (tile_n, 1)
        xf = x.astype(jnp.float32)
        neg_inf = jnp.full(xf.shape, -jnp.inf, jnp.float32)      # hoisted

        def max_chunk(g0):
            rows = [jnp.max(jnp.where(b == (g0 + r), xf, neg_inf),
                            axis=0, keepdims=True) for r in range(8)]
            blk = jnp.concatenate(rows, axis=0)                  # (8, tile_d)
            cur = o_ref[pl.ds(g0, 8), :]
            o_ref[pl.ds(g0, 8), :] = jnp.maximum(cur, blk)

        n_chunks = window // 8
        if n_chunks <= 8:                      # static full unroll (LLO visibility)
            for c in range(n_chunks):
                max_chunk(_off(g_lo + c * 8))
        else:
            def body(c, carry):
                max_chunk(_off(g_lo + c * 8))
                return carry
            lax.fori_loop(0, n_chunks, body, 0)

    if aggr == "max":
        @pl.when(i == last)
        def _():
            o = o_ref[...]
            # Empty / padded graph rows -> 0 (PyG scatter-max fallback).
            o_ref[...] = jnp.where(o == -jnp.inf, 0.0, o)


def global_pool(x, batch, num_graphs, aggr="add", max_tile_n=1024, tile_d=None):
    """Pallas GlobalPool.  x: [N, D], batch: [N] int graph ids -> [num_graphs, D]."""
    assert aggr in ("add", "mean", "max")
    assert max_tile_n % 128 == 0
    n, d = x.shape
    orig_dtype = x.dtype
    if x.dtype not in (jnp.float32, jnp.bfloat16):
        x = x.astype(jnp.float32)
    batch = batch.astype(jnp.int32)
    num_graphs = int(num_graphs)

    g_pad = _round_up(max(num_graphs, 1), 8)
    tile_n, tile_d, vmem_budget = _choose_tiles(
        n, d, g_pad, x.dtype.itemsize, max_tile_n, tile_d)
    num_n = -(-n // tile_n)
    n_pad = num_n * tile_n
    num_d = d // tile_d

    # Extra pipeline depth on the dominant HBM stream when VMEM headroom allows.
    x_bufs = 2
    if (hasattr(pl, "Buffered") and num_n >= 4
            and _est_vmem(tile_n, tile_d, g_pad, x.dtype.itemsize, 3) <= vmem_budget):
        x_bufs = 3

    # Per-node-tile graph windows (scalar prefetch).  With a sorted PyG-style
    # batch vector each tile touches a narrow contiguous graph range; restrict
    # the one-hot / max loop to that range.  Falls back to the full span when
    # batch values are not inspectable (e.g. under jit).
    g_lo_np = np.zeros((num_n,), np.int32)
    window = g_pad
    try:
        bh = np.asarray(jax.device_get(batch), dtype=np.int64)
        bh = np.clip(bh, 0, g_pad - 1)
        w_need, los = 8, []
        for t in range(num_n):
            seg = bh[t * tile_n: min((t + 1) * tile_n, n)]
            lo8 = int(seg.min()) // 8 * 8
            w_need = max(w_need, int(seg.max()) - lo8 + 1)
            los.append(lo8)
        window = min(_round_up(w_need, 8), g_pad)
        g_lo_np = np.minimum(np.asarray(los, np.int32), g_pad - window)
    except Exception:
        window, g_lo_np = g_pad, np.zeros((num_n,), np.int32)
    g_lo_arr = jnp.asarray(g_lo_np, jnp.int32)

    # Only the tiny batch-id vector is padded (sentinel -1 never matches a graph).
    if aggr == "max":
        if n_pad == n:
            b_arr = batch.reshape(n_pad, 1)
        else:
            b_arr = jnp.full((n_pad, 1), -1, jnp.int32).at[:n, 0].set(batch)
        b_spec = pl.BlockSpec((tile_n, 1), lambda j, i, glo: (i, 0))
    else:
        if n_pad == n:
            b_arr = batch.reshape(1, n_pad)
        else:
            b_arr = jnp.full((1, n_pad), -1, jnp.int32).at[0, :n].set(batch)
        b_spec = pl.BlockSpec((1, tile_n), lambda j, i, glo: (0, i))

    kernel = functools.partial(_global_pool_kernel, aggr=aggr, window=int(window),
                               g_pad=g_pad, tile_n=tile_n, n_valid=n)

    out = pl.pallas_call(
        kernel,
        out_shape=jax.ShapeDtypeStruct((g_pad, d), jnp.float32),
        grid_spec=pltpu.PrefetchScalarGridSpec(
            num_scalar_prefetch=1,
            grid=(num_d, num_n),                    # (feature, node-reduction)
            in_specs=[
                b_spec,                                         # batch ids
                _make_x_spec(tile_n, tile_d, x_bufs),           # x tile
            ],
            out_specs=pl.BlockSpec((g_pad, tile_d), lambda j, i, glo: (0, j)),
            scratch_shapes=[],
        ),
        compiler_params=pltpu.CompilerParams(
            dimension_semantics=("parallel", "arbitrary"),
            vmem_limit_bytes=int(vmem_budget)),
    )(g_lo_arr, b_arr, x)

    out = out[:num_graphs]
    if aggr == "mean":
        # Counts computed in the wrapper (tiny segment_sum), per perf review.
        counts = jax.ops.segment_sum(jnp.ones((n,), jnp.float32), batch,
                                     num_segments=num_graphs)
        out = out / jnp.maximum(counts, 1.0)[:, None]
    return out.astype(orig_dtype)


def _reference(x, batch, num_graphs, aggr):
    xf = x.astype(jnp.float32)
    if aggr == "add":
        return jax.ops.segment_sum(xf, batch, num_segments=num_graphs)
    if aggr == "mean":
        s = jax.ops.segment_sum(xf, batch, num_segments=num_graphs)
        c = jax.ops.segment_sum(jnp.ones((x.shape[0], 1), jnp.float32),
                                batch, num_segments=num_graphs)
        return s / jnp.maximum(c, 1.0)
    return jax.ops.segment_max(xf, batch, num_segments=num_graphs)


def _make_batch(key, num_nodes, num_graphs):
    # Sorted PyG-style batch vector, every graph non-empty.
    ids = jnp.concatenate([
        jnp.arange(num_graphs, dtype=jnp.int32),
        jax.random.randint(key, (num_nodes - num_graphs,), 0, num_graphs,
                           dtype=jnp.int32),
    ])
    return jnp.sort(ids)


if __name__ == "__main__":
    key = jax.random.PRNGKey(0)
    ok = True

    # (nodes, feat, graphs, dtype, max_tile_n, aggrs, tol)
    cases = [
        (16,  32,  3,  jnp.float32, 1024, ("add", "mean", "max"), 1e-5),
        (200, 256, 5,  jnp.float32, 128,  ("add", "mean", "max"), 1e-4),  # ragged,
                                                                          # 2 feat tiles
        (384, 128, 24, jnp.float32, 128,  ("add", "max"),         1e-4),  # windowed path
        (16,  32,  3,  jnp.bfloat16, 1024, ("add",),              5e-2),  # bf16 MXU
    ]

    for idx, (n, d, g, dt, mt, aggrs, tol) in enumerate(cases):
        k1, k2, key = jax.random.split(key, 3)
        x = jax.random.normal(k1, (n, d), dtype=jnp.float32).astype(dt)
        batch = _make_batch(k2, n, g)
        for aggr in aggrs:
            out = global_pool(x, batch, g, aggr=aggr, max_tile_n=mt)
            out = jax.block_until_ready(out).astype(jnp.float32)
            ref = _reference(x, batch, g, aggr)
            if not jnp.allclose(out, ref, atol=tol, rtol=tol):
                ok = False
                err = float(jnp.max(jnp.abs(out - ref)))
                print(f"MISMATCH case={idx} aggr={aggr} max_abs_err={err}")

    if ok:
        print("KERNEL_OK")
</pallas_src>

<mosaic_0001>
module attributes {stable_mosaic.version = 11 : i64} {
  func.func @_global_pool_kernel(%arg0: i32, %arg1: i32, %arg2: memref<1xi32, #tpu.memory_space<smem>>, %arg3: memref<1x128xi32, #tpu.memory_space<vmem>>, %arg4: memref<128x32xf32, #tpu.memory_space<vmem>>, %arg5: memref<8x32xf32, #tpu.memory_space<vmem>>) attributes {dimension_semantics = [#tpu.dimension_semantics<parallel>, #tpu.dimension_semantics<arbitrary>], iteration_bounds = array<i64: 1, 1>, scalar_prefetch = 1 : i64, scratch_operands = 0 : i64, tpu.core_type = #tpu.core_type<tc>, window_params = [{transform_indices = @transform_0, window_bounds = array<i64: 1, 128>}, {transform_indices = @transform_1, window_bounds = array<i64: 128, 32>}, {transform_indices = @transform_2, window_bounds = array<i64: 8, 32>}]} {
    %c0_i32 = arith.constant 0 : i32
    %0 = arith.cmpi eq, %arg1, %c0_i32 : i32
    %1 = arith.extui %0 : i1 to i32
    %c0_i32_0 = arith.constant 0 : i32
    %2 = arith.cmpi ne, %1, %c0_i32_0 : i32
    scf.if %2 {
      %cst_11 = arith.constant 0.000000e+00 : f32
      %19 = vector.broadcast %cst_11 : f32 to vector<8x32xf32>
      %c0_12 = arith.constant 0 : index
      %c0_13 = arith.constant 0 : index
      %20 = vector.load %arg5[%c0_12, %c0_13] : memref<8x32xf32, #tpu.memory_space<vmem>>, vector<8x32xf32>
      tpu.vector_store %arg5[%c0_12, %c0_13], %19 {strides = array<i32>} : memref<8x32xf32, #tpu.memory_space<vmem>>, vector<8x32xf32>,
    } else {
    }
    %c0_i32_1 = arith.constant 0 : i32
    %3 = arith.cmpi eq, %arg1, %c0_i32_1 : i32
    %4 = arith.extui %3 : i1 to i32
    %c0_i32_2 = arith.constant 0 : i32
    %5 = arith.cmpi ne, %4, %c0_i32_2 : i32
    scf.if %5 {
      %cst_11 = arith.constant 0.000000e+00 : f32
      %19 = vector.broadcast %cst_11 : f32 to vector<112x32xf32>
      %c16 = arith.constant 16 : index
      %c0_12 = arith.constant 0 : index
      %20 = vector.load %arg4[%c16, %c0_12] : memref<128x32xf32, #tpu.memory_space<vmem>>, vector<112x32xf32>
      tpu.vector_store %arg4[%c16, %c0_12], %19 {strides = array<i32>} : memref<128x32xf32, #tpu.memory_space<vmem>>, vector<112x32xf32>,
    } else {
    }
    %c0 = arith.constant 0 : index
    %c0_3 = arith.constant 0 : index
    %6 = vector.load %arg4[%c0, %c0_3] : memref<128x32xf32, #tpu.memory_space<vmem>>, vector<128x32xf32>
    %c0_4 = arith.constant 0 : index
    %c0_5 = arith.constant 0 : index
    %7 = vector.load %arg3[%c0_4, %c0_5] : memref<1x128xi32, #tpu.memory_space<vmem>>, vector<1x128xi32>
    %8 = tpu.iota {dimensions = array<i32: 0>} : vector<8x128xi32>
    %c0_i32_6 = arith.constant 0 : i32
    %9 = vector.broadcast %c0_i32_6 : i32 to vector<8x128xi32>
    %10 = arith.addi %8, %9 : vector<8x128xi32>
    %11 = vector.broadcast %7 : vector<1x128xi32> to vector<8x128xi32>
    %12 = arith.cmpi eq, %10, %11 : vector<8x128xi32>
    %13 = arith.extui %12 : vector<8x128xi1> to vector<8x128xi32>
    %14 = arith.sitofp %13 : vector<8x128xi32> to vector<8x128xf32>
    %cst = arith.constant dense<0.000000e+00> : vector<8x32xf32>
    %15 = tpu.matmul %14, %6, %cst {dimension_numbers = #tpu.dot_dimension_numbers<[1], [0], [0], [1], [0, 0, 1, 1], [], []>} : vector<8x128xf32>, vector<128x32xf32>, vector<8x32xf32> -> vector<8x32xf32>
    %c0_7 = arith.constant 0 : index
    %c0_8 = arith.constant 0 : index
    %16 = vector.load %arg5[%c0_7, %c0_8] : memref<8x32xf32, #tpu.memory_space<vmem>>, vector<8x32xf32>
    %17 = arith.addf %16, %15 : vector<8x32xf32>
    %c0_9 = arith.constant 0 : index
    %c0_10 = arith.constant 0 : index
    %18 = vector.load %arg5[%c0_9, %c0_10] : memref<8x32xf32, #tpu.memory_space<vmem>>, vector<8x32xf32>
    tpu.vector_store %arg5[%c0_9, %c0_10], %17 {strides = array<i32>} : memref<8x32xf32, #tpu.memory_space<vmem>>, vector<8x32xf32>,
    return
  }
  func.func @transform_0(%arg0: i32, %arg1: i32, %arg2: memref<1xi32, #tpu.memory_space<smem>>) -> (i32, i32) {
    %c0_i32 = arith.constant 0 : i32
    %c0_i32_0 = arith.constant 0 : i32
    return %c0_i32, %arg1 : i32, i32
  }
  func.func @transform_1(%arg0: i32, %arg1: i32, %arg2: memref<1xi32, #tpu.memory_space<smem>>) -> (i32, i32) {
    %c0_i32 = arith.constant 0 : i32
    return %arg1, %arg0 : i32, i32
  }
  func.func @transform_2(%arg0: i32, %arg1: i32, %arg2: memref<1xi32, #tpu.memory_space<smem>>) -> (i32, i32) {
    %c0_i32 = arith.constant 0 : i32
    %c0_i32_0 = arith.constant 0 : i32
    return %c0_i32, %arg0 : i32, i32
  }
}

</mosaic_0001>

<bundles_post_ra>
// kernel: tpu_custom_call.1
= control target key start
LH: loop header
LB: loop body
LE: loop exit
PB: predicated region body
PF: predicated region fallthrough
CT: control target
= control target key end

     0   :  { %9 = vsyncpa [#allocation5], 0  ;;  %s369_s0 = inlined_call_operand.<no memory space> [shape: s32[1], index: 0, kind: input, shape index: {}]   ;;  %s370_s1 = inlined_call_operand.vmem [shape: s32[1,128], index: 1, kind: input, shape index: {}]   ;;  %s371_s2 = inlined_call_operand.hbm [shape: f32[16,32], index: 2, kind: input, shape index: {}]   ;;  %s372_s3 = inlined_call_operand.hbm [shape: f32[8,32], index: 3, kind: output, shape index: {}]  }
   0x1   :  { %10 = vsyncpa [#allocation6], 0 }
   0x2   :  { %17 = vsyncadd [#allocation5], 1792  ;;  %s298_s12 = smov [#allocation4]   ;;  %s250_s16 = scalar_lea.hbm %s371_s2, 256 }
   0x3   :  { %s18_s13 = sshll.u32 %s298_s12, 4  ;;  %p251_p0 = scmp.ne.s32.totalorder %s371_s2, %s250_s16  ;;  %s19_s13 = int_to_ptr.vmem [resolvable:$true] %s18_s13 }
   0x4   :  { %p254_p1 = scmp.lt.u32.totalorder %s250_s16, %s371_s2 }
   0x6   :  { %p256_p2 = pnand %p254_p1, %p251_p0 }
   0x8   :  { %259 = shalt.err (!%p256_p2)
}
   0x9   :  { %s260_s20 = scalar_lea.vmem %s19_s13, 256  ;;  %s264_s21 = scalar_lea.vmem %s19_s13, 2048 }
   0xa   :  { %p261_p3 = scmp.ne.s32.totalorder %s19_s13, %s260_s20  ;;  %p265_p4 = scmp.lt.s32.totalorder %s19_s13, %s19_s13 }
   0xb   :  { %p266_p5 = scmp.lt.s32.totalorder %s264_s21, %s260_s20 }
   0xd   :  { %p267_p6 = por %p266_p5, %p265_p4 }
   0xf   :  { %p268_p7 = pnand %p267_p6, %p261_p3 }
  0x11   :  { %271 = shalt.err (!%p268_p7)
}
  0x12   :  { %s299_s22 = smov 128   ;;  %s300_s23 = smov 8  }
  0x13   :  { %24 = dma.hbm_to_vmem [thread:$0]  %s371_s2, 256, %s19_s13, [#allocation5], %s299_s22, %s299_s22, %s300_s23  }
  0x14   :  { %294 = dma.done.wait [#allocation5], 2048  }
  0x15   :  { %295 = vsyncadd [#allocation5], 4294965248  ;;  %vm32_vm0 = vcmask 261120   ;;  %v301_v0 = vmov 0.0|0.0   ;;  %v302_v1 = vmov 0.0   ;;  %vm303_vm1 = vmmov 0  }
  0x16   :  { %218 = vmatprep.subr.bf16.mxu0 %v301_v0  ;;  %34 = vst.msk [vmem:[#allocation4 + $0x10] sm:$0xff] %vm32_vm0, %v302_v1  ;;  %35 = vst.msk [vmem:[#allocation4 + $0x18] sm:$0xff] %vm32_vm0, %v302_v1  ;;  %215 = vmatprep.mubr.msk.f32.mxu0 %vm303_vm1, %v302_v1  ;;  %v48_v2 = vld [vmem:[#allocation4] sm:$0xff]  ;;  %v49_v3 = vld [vmem:[#allocation4 + $0x8] sm:$0xff]  ;;  %v65_v23 = vlaneseq  ;;  %v304_v29 = vmov 1.0   ;;  %s305_s27 = smov [#allocation7]  }
  0x17   :  { %33 = vst.msk [vmem:[#allocation7] sm:$0xff] %vm32_vm0, %v302_v1  ;;  %36 = vst.msk [vmem:[#allocation4 + $0x20] sm:$0xff] %vm32_vm0, %v302_v1  ;;  %v219_v4 = vpack.c.bf16 %v49_v3, %v48_v2  ;;  %v163_v28 = vld [vmem:[%s370_s1] ss:$0 sm:$0xff]  ;;  %s154_s28 = sshll.u32 %s305_s27, 4  ;;  %s155_s28 = int_to_ptr.vmem [resolvable:$true] %s154_s28 }
  0x18   :  { %37 = vst.msk [vmem:[#allocation4 + $0x28] sm:$0xff] %vm32_vm0, %v302_v1  ;;  %38 = vst.msk [vmem:[#allocation4 + $0x30] sm:$0xff] %vm32_vm0, %v302_v1  ;;  %v66_v27 = vshrl.u32 %v65_v23, 7  ;;  %s272_s29 = scalar_lea.vmem %s155_s28, 128  ;;  %p277_p9 = scmp.lt.s32.totalorder %s155_s28, %s155_s28 }
  0x19   :  { %39 = vst.msk [vmem:[#allocation4 + $0x38] sm:$0xff] %vm32_vm0, %v302_v1  ;;  %40 = vst.msk [vmem:[#allocation4 + $0x40] sm:$0xff] %vm32_vm0, %v302_v1  ;;  %220 = vmatpush3.bf16.msra.mxu0 %v219_v4  ;;  %p273_p8 = scmp.ne.s32.totalorder %s155_s28, %s272_s29  ;;  %p278_p10 = scmp.lt.s32.totalorder %s272_s29, %s272_s29 }
  0x1a   :  { %41 = vst.msk [vmem:[#allocation4 + $0x48] sm:$0xff] %vm32_vm0, %v302_v1  ;;  %42 = vst.msk [vmem:[#allocation4 + $0x50] sm:$0xff] %vm32_vm0, %v302_v1  ;;  %221 = vmatprep.subr.bf16.mxu0 %v301_v0  ;;  %vm71_vm2 = vcmp.eq.s32.totalorder %v66_v27, %v163_v28 }
  0x1b   :  { %43 = vst.msk [vmem:[#allocation4 + $0x58] sm:$0xff] %vm32_vm0, %v302_v1  ;;  %44 = vst.msk [vmem:[#allocation4 + $0x60] sm:$0xff] %vm32_vm0, %v302_v1  ;;  %p279_p11 = por %p278_p10, %p277_p9 }
  0x1c   :  { %45 = vst.msk [vmem:[#allocation4 + $0x68] sm:$0xff] %vm32_vm0, %v302_v1  ;;  %46 = vst.msk [vmem:[#allocation4 + $0x70] sm:$0xff] %vm32_vm0, %v302_v1 }
  0x1d   :  { %47 = vst.msk [vmem:[#allocation4 + $0x78] sm:$0xff] %vm32_vm0, %v302_v1  ;;  %v50_v5 = vld [vmem:[#allocation4 + $0x10] sm:$0xff]  ;;  %v51_v6 = vld [vmem:[#allocation4 + $0x18] sm:$0xff]  ;;  %p280_p12 = pnand %p279_p11, %p273_p8 }
  0x1e   :  { %v222_v7 = vpack.c.bf16 %v51_v6, %v50_v5  ;;  %v52_v8 = vld [vmem:[#allocation4 + $0x20] sm:$0xff] }
  0x1f   :  { %v53_v9 = vld [vmem:[#allocation4 + $0x28] sm:$0xff]  ;;  %v54_v11 = vld [vmem:[#allocation4 + $0x30] sm:$0xff]  ;;  %v144_v30 = vld [vmem:[#allocation7] sm:$0xff] }
  0x20   :  { %223 = vmatpush3.bf16.msra.mxu0 %v222_v7  ;;  %v225_v10 = vpack.c.bf16 %v53_v9, %v52_v8  ;;  %v55_v12 = vld [vmem:[#allocation4 + $0x38] sm:$0xff]  ;;  %v56_v14 = vld [vmem:[#allocation4 + $0x40] sm:$0xff] }
  0x21   :  { %224 = vmatprep.subr.bf16.mxu0 %v301_v0  ;;  %v228_v13 = vpack.c.bf16 %v55_v12, %v54_v11  ;;  %v57_v15 = vld [vmem:[#allocation4 + $0x48] sm:$0xff]  ;;  %v58_v17 = vld [vmem:[#allocation4 + $0x50] sm:$0xff] }
  0x22   :  { %v231_v16 = vpack.c.bf16 %v57_v15, %v56_v14  ;;  %v59_v18 = vld [vmem:[#allocation4 + $0x58] sm:$0xff]  ;;  %v60_v20 = vld [vmem:[#allocation4 + $0x60] sm:$0xff] }
  0x23   :  { %v234_v19 = vpack.c.bf16 %v59_v18, %v58_v17  ;;  %v61_v21 = vld [vmem:[#allocation4 + $0x68] sm:$0xff]  ;;  %v62_v24 = vld [vmem:[#allocation4 + $0x70] sm:$0xff] }
  0x24   :  { %226 = vmatpush3.bf16.msra.mxu0 %v225_v10  ;;  %v237_v22 = vpack.c.bf16 %v61_v21, %v60_v20  ;;  %v63_v25 = vld [vmem:[#allocation4 + $0x78] sm:$0xff] }
  0x25   :  { %227 = vmatprep.subr.bf16.mxu0 %v301_v0  ;;  %v240_v26 = vpack.c.bf16 %v63_v25, %v62_v24 }
  0x28   :  { %229 = vmatpush3.bf16.msra.mxu0 %v228_v13 }
  0x29   :  { %230 = vmatprep.subr.bf16.mxu0 %v301_v0 }
  0x2c   :  { %232 = vmatpush3.bf16.msra.mxu0 %v231_v16 }
  0x2d   :  { %233 = vmatprep.subr.bf16.mxu0 %v301_v0 }
  0x30   :  { %235 = vmatpush3.bf16.msra.mxu0 %v234_v19 }
  0x31   :  { %236 = vmatprep.subr.bf16.mxu0 %v301_v0 }
  0x34   :  { %238 = vmatpush3.bf16.msra.mxu0 %v237_v22 }
  0x35   :  { %239 = vmatprep.subr.bf16.mxu0 %v301_v0 }
  0x38   :  { %241 = vmatpush3.bf16.msra.mxu0 %v240_v26 }
  0x3b   :  { %216 = vmatmul.mubr.msk.f32.vlgmr.msra.gmra.mrb[0].mxu0 %vm71_vm2, %v304_v29 }
 0x10e   :  { %v140_v31 = vpop.f32.mrb[0].mxu0 }
 0x10f   :  { %v145_v32 = vadd.f32 %v144_v30, %v140_v31  ;;  %v217_v33 = vpop.f32.mrb[1].mxu0 }
 0x111   :  { %147 = vst.msk [vmem:[#allocation7] sm:$0xff] %vm32_vm0, %v145_v32 }
 0x112   :  { %283 = shalt.err (!%p280_p12)
}
 0x113   :  { %s284_s4 = scalar_lea.hbm %s372_s3, 128 }
 0x114   :  { %p285_p13 = scmp.ne.s32.totalorder %s372_s3, %s284_s4  ;;  %p288_p0 = scmp.lt.u32.totalorder %s284_s4, %s372_s3 }
 0x116   :  { %p290_p1 = pnand %p288_p0, %p285_p13 }
 0x118   :  { %293 = shalt.err (!%p290_p1)
}
 0x119   :  { %157 = dma.vmem_to_hbm [thread:$0]  %s155_s28, 128, %s372_s3, [#allocation6]  }
 0x11a   :  { %296 = dma.done.wait [#allocation6], 128  }
 0x11b   :  { %297 = vsyncadd [#allocation6], 4294967168 }
 0x11c   :  { %161 = vsyncpa [#allocation5], 1 }
 0x11d   :  { %162 = vsyncpa [#allocation6], 1 }

</bundles_post_ra>
